<compile_context>
chip_gen: v5e
topology: v5e:2x2
jax: 0.10.0
libtpu: 0.0.40
codegen_flags: <defaults>
</compile_context>

<pallas_src>
import math

import jax
import jax.numpy as jnp
from jax.experimental import pallas as pl
from jax.experimental.pallas import tpu as pltpu

_MAX_BATCH_UNROLL = 64          # cap on per-step batch unrolling inside the kernel
_VMEM_BUDGET_BYTES = 32 << 20   # conservative tiling budget (fits v5e/v6e/v7x)
_VMEM_LIMIT_BYTES = 48 << 20    # scoped-VMEM limit handed to Mosaic
_TARGET_BLOCK_BYTES = 2 << 20   # ~2 MiB of input per grid step (HBM-roofline regime)


def _round_up(x, m):
    return ((x + m - 1) // m) * m


def _cdiv(a, b):
    return (a + b - 1) // b


# --------------------------------------------------------------------------- #
# Parameter folding (done once, outside the per-forward hot path)
# --------------------------------------------------------------------------- #
def fold_params(params, eps=1e-5):
    """Fold eval-mode BN into per-channel affines and fold the BN scales of
    layers i>=1 into the previous layer's 1x1 conv weight.

    Returns (scale0[C0,1], shifts=[(Ci,1)] * depth, weights=[(C_{i+1}, C_i)] * depth).
    """
    scales, shifts, weights = [], [], []
    for p in params:
        s = (p["gamma"] / jnp.sqrt(p["var"] + eps)).astype(jnp.float32)
        b = (p["beta"] - p["mean"] * s).astype(jnp.float32)
        scales.append(s)
        shifts.append(b.reshape(-1, 1))
        weights.append(p["weight"].astype(jnp.float32))  # (Cout, Cin)
    # W'_i = diag(scale_{i+1}) @ W_i  -> layer i+1 needs only its shift.
    for i in range(len(weights) - 1):
        weights[i] = scales[i + 1][:, None] * weights[i]
    return scales[0].reshape(-1, 1), shifts, weights


# --------------------------------------------------------------------------- #
# Kernel
# --------------------------------------------------------------------------- #
def _make_fused_kernel(depth, b_blk):
    """Kernel over refs: (x, scale0, shift0, W0, shift1, W1, ..., out)."""

    def kernel(*refs):
        x_ref = refs[0]
        o_ref = refs[-1]
        s0 = refs[1][...]                                    # (C0, 1)
        shifts = [refs[2 + 2 * i][...] for i in range(depth)]
        weights = [refs[3 + 2 * i][...] for i in range(depth)]
        # Unrolled batch loop: each iteration is a plain 2-D (C, T) chain so
        # every matmul is a clean MXU dot and every store is lane-dense.
        for j in range(b_blk):
            h = x_ref[j].astype(jnp.float32)                 # (C0, T)
            for i in range(depth):
                pre = h * s0 + shifts[i] if i == 0 else h + shifts[i]
                h = jnp.maximum(pre, 0.0)
                h = jnp.dot(weights[i], h, preferred_element_type=jnp.float32)
            o_ref[j] = h.astype(o_ref.dtype)

    return kernel


# --------------------------------------------------------------------------- #
# Tiling heuristics
# --------------------------------------------------------------------------- #
def _choose_tiling(n, chans, hw, *, target_block_bytes=_TARGET_BLOCK_BYTES,
                   vmem_budget_bytes=_VMEM_BUDGET_BYTES):
    """Pick (b_blk, n_pad, tile_s, hw_pad)."""
    c0, cout, cmax = chans[0], chans[-1], max(chans)
    hw_pad = _round_up(hw, 128)

    # Per-column (one batch x one spatial element) f32 VMEM footprint:
    # double-buffered input + output blocks, plus an in/out activation pair.
    bytes_per_col = 4 * (2 * (c0 + cout) + 2 * cmax)
    weight_bytes = 4 * 2 * sum(chans[i] * chans[i + 1] + 2 * chans[i]
                               for i in range(len(chans) - 1))
    max_cols_vmem = max(128, (vmem_budget_bytes - weight_bytes) // bytes_per_col)

    # Target DMA grain (~target_block_bytes of input per grid step).
    target_cols = max(128, target_block_bytes // (4 * c0))
    target_cols = min(target_cols, max_cols_vmem)

    if hw_pad <= target_cols:
        tile_s = hw_pad
        b_blk = min(n, max(1, target_cols // hw_pad), _MAX_BATCH_UNROLL)
    else:
        # Split the 128-padded spatial extent into near-equal multiple-of-128
        # tiles (avoids round_up(hw, tile_s) tail blow-up).
        units = hw_pad // 128
        max_units = max(1, target_cols // 128)
        n_tiles = _cdiv(units, max_units)
        tile_s = _cdiv(units, n_tiles) * 128
        hw_pad = tile_s * n_tiles
        b_blk = 1

    n_pad = _round_up(n, b_blk)

    # Keep >= 2 grid steps when a single large tile would collapse the grid
    # (feeds both TensorCores on v7x and keeps the DMA pipeline busy).
    if (n_pad // b_blk) * (hw_pad // tile_s) == 1 and tile_s >= 2048:
        units = tile_s // 128
        tile_s = _cdiv(units, 2) * 128
        hw_pad = tile_s * 2

    return b_blk, n_pad, tile_s, hw_pad


# --------------------------------------------------------------------------- #
# Fused forward pass
# --------------------------------------------------------------------------- #
def conv1x1_regressor_forward(x_nchw, folded):
    """Fused forward pass matching Conv1x1Regressor.forward (eval-mode BN).

    x_nchw: (N, C, H, W) float32
    folded: output of fold_params()
    returns (N, Cout_last, H, W) float32
    """
    scale0, shifts, weights = folded
    depth = len(weights)
    n, c, h, w = x_nchw.shape
    hw = h * w
    chans = [c] + [wt.shape[0] for wt in weights]
    cout_last = chans[-1]

    b_blk, n_pad, tile_s, hw_pad = _choose_tiling(n, chans, hw)

    x = x_nchw.reshape(n, c, hw)
    if hw_pad != hw or n_pad != n:
        # Zero padding is harmless: padded rows/columns are sliced off afterwards.
        x = jnp.pad(x, ((0, n_pad - n), (0, 0), (0, hw_pad - hw)))

    flat_args = [x, scale0, shifts[0], weights[0]]
    in_specs = [
        pl.BlockSpec((b_blk, c, tile_s), lambda b_i, s_i: (b_i, 0, s_i)),
        pl.BlockSpec(scale0.shape, lambda b_i, s_i: (0, 0)),
        pl.BlockSpec(shifts[0].shape, lambda b_i, s_i: (0, 0)),
        pl.BlockSpec(weights[0].shape, lambda b_i, s_i: (0, 0)),
    ]
    for i in range(1, depth):
        flat_args += [shifts[i], weights[i]]
        in_specs += [
            pl.BlockSpec(shifts[i].shape, lambda b_i, s_i: (0, 0)),
            pl.BlockSpec(weights[i].shape, lambda b_i, s_i: (0, 0)),
        ]

    out = pl.pallas_call(
        _make_fused_kernel(depth, b_blk),
        out_shape=jax.ShapeDtypeStruct((n_pad, cout_last, hw_pad), jnp.float32),
        grid=(n_pad // b_blk, hw_pad // tile_s),
        in_specs=in_specs,
        out_specs=pl.BlockSpec((b_blk, cout_last, tile_s),
                               lambda b_i, s_i: (b_i, 0, s_i)),
        compiler_params=pltpu.CompilerParams(
            dimension_semantics=("parallel", "parallel"),
            vmem_limit_bytes=_VMEM_LIMIT_BYTES),
    )(*flat_args)

    if hw_pad != hw or n_pad != n:
        out = out[:n, :, :hw]
    return out.reshape(n, cout_last, h, w)


# --------------------------------------------------------------------------- #
# Parameters + pure-JAX reference
# --------------------------------------------------------------------------- #
def init_params(planes, key):
    """Deterministic parameters matching Conv1x1Regressor(planes) shapes.
    BN params are randomized so that the BN folding is actually exercised."""
    params = []
    depth = len(planes) - 1
    for i in range(depth):
        cin, cout = planes[i], planes[i + 1]
        key, kw, kg, kb, km, kv = jax.random.split(key, 6)
        gamma = jax.random.uniform(kg, (cin,), jnp.float32, 0.5, 1.5)
        beta = 0.1 * jax.random.normal(kb, (cin,), jnp.float32)
        running_mean = 0.1 * jax.random.normal(km, (cin,), jnp.float32)
        running_var = jax.random.uniform(kv, (cin,), jnp.float32, 0.5, 1.5)
        bound = 1.0 / math.sqrt(cin)
        w_torch = jax.random.uniform(kw, (cout, cin), jnp.float32,
                                     minval=-bound, maxval=bound)
        params.append(dict(gamma=gamma, beta=beta,
                           mean=running_mean, var=running_var,
                           weight=w_torch))
    return params


def reference_forward(x_nchw, params, eps=1e-5):
    """Pure-JAX reference (same math, no Pallas, no folding)."""
    out = x_nchw
    for p in params:
        scale = p["gamma"] / jnp.sqrt(p["var"] + eps)
        shift = p["beta"] - p["mean"] * scale
        h = jnp.maximum(out * scale[None, :, None, None]
                        + shift[None, :, None, None], 0.0)
        out = jnp.einsum("oc,nchw->nohw", p["weight"], h)
    return out


if __name__ == "__main__":
    planes = [4, 8, 16]            # Conv1x1Regressor(planes): 2 BN->ReLU->conv1x1 blocks
    key = jax.random.PRNGKey(0)
    kx, kx2, kp = jax.random.split(key, 3)

    params = init_params(planes, kp)
    folded = fold_params(params)   # folded once (inference)

    # Primary check: the spec's small shape.
    x = jax.random.normal(kx, (2, 4, 16, 16), jnp.float32)   # NCHW, like torch
    out = jax.block_until_ready(conv1x1_regressor_forward(x, folded))
    ref = reference_forward(x, params)
    assert out.shape == (2, planes[-1], 16, 16), out.shape
    assert jnp.allclose(out, ref, atol=1e-4, rtol=1e-4), "mismatch vs reference"

    # Secondary check: odd spatial size exercises the 128-padding / slicing path.
    x2 = jax.random.normal(kx2, (3, 4, 17, 19), jnp.float32)
    out2 = jax.block_until_ready(conv1x1_regressor_forward(x2, folded))
    ref2 = reference_forward(x2, params)
    assert out2.shape == (3, planes[-1], 17, 19), out2.shape
    assert jnp.allclose(out2, ref2, atol=1e-4, rtol=1e-4), "mismatch vs reference (padded)"

    print("KERNEL_OK")
</pallas_src>

<mosaic_0001>
module attributes {stable_mosaic.version = 11 : i64} {
  func.func @kernel(%arg0: i32, %arg1: i32, %arg2: memref<2x4x256xf32, #tpu.memory_space<vmem>>, %arg3: memref<4x1xf32, #tpu.memory_space<vmem>>, %arg4: memref<4x1xf32, #tpu.memory_space<vmem>>, %arg5: memref<8x4xf32, #tpu.memory_space<vmem>>, %arg6: memref<8x1xf32, #tpu.memory_space<vmem>>, %arg7: memref<16x8xf32, #tpu.memory_space<vmem>>, %arg8: memref<2x16x256xf32, #tpu.memory_space<vmem>>) attributes {dimension_semantics = [#tpu.dimension_semantics<parallel>, #tpu.dimension_semantics<parallel>], iteration_bounds = array<i64: 1, 1>, scalar_prefetch = 0 : i64, scratch_operands = 0 : i64, tpu.core_type = #tpu.core_type<tc>, window_params = [{transform_indices = @transform_0, window_bounds = array<i64: 2, 4, 256>}, {pipeline_mode = #tpu.pipeline_mode<synchronous>, transform_indices = @transform_1, window_bounds = array<i64: 4, 1>}, {pipeline_mode = #tpu.pipeline_mode<synchronous>, transform_indices = @transform_2, window_bounds = array<i64: 4, 1>}, {pipeline_mode = #tpu.pipeline_mode<synchronous>, transform_indices = @transform_3, window_bounds = array<i64: 8, 4>}, {pipeline_mode = #tpu.pipeline_mode<synchronous>, transform_indices = @transform_4, window_bounds = array<i64: 8, 1>}, {pipeline_mode = #tpu.pipeline_mode<synchronous>, transform_indices = @transform_5, window_bounds = array<i64: 16, 8>}, {transform_indices = @transform_6, window_bounds = array<i64: 2, 16, 256>}]} {
    %c0 = arith.constant 0 : index
    %c0_0 = arith.constant 0 : index
    %0 = vector.load %arg3[%c0, %c0_0] : memref<4x1xf32, #tpu.memory_space<vmem>>, vector<4x1xf32>
    %c0_1 = arith.constant 0 : index
    %c0_2 = arith.constant 0 : index
    %1 = vector.load %arg4[%c0_1, %c0_2] : memref<4x1xf32, #tpu.memory_space<vmem>>, vector<4x1xf32>
    %c0_3 = arith.constant 0 : index
    %c0_4 = arith.constant 0 : index
    %2 = vector.load %arg6[%c0_3, %c0_4] : memref<8x1xf32, #tpu.memory_space<vmem>>, vector<8x1xf32>
    %c0_5 = arith.constant 0 : index
    %c0_6 = arith.constant 0 : index
    %3 = vector.load %arg5[%c0_5, %c0_6] : memref<8x4xf32, #tpu.memory_space<vmem>>, vector<8x4xf32>
    %c0_7 = arith.constant 0 : index
    %c0_8 = arith.constant 0 : index
    %4 = vector.load %arg7[%c0_7, %c0_8] : memref<16x8xf32, #tpu.memory_space<vmem>>, vector<16x8xf32>
    %c0_9 = arith.constant 0 : index
    %c0_10 = arith.constant 0 : index
    %c0_11 = arith.constant 0 : index
    %5 = vector.load %arg2[%c0_9, %c0_10, %c0_11] : memref<2x4x256xf32, #tpu.memory_space<vmem>>, vector<1x4x256xf32>
    %6 = vector.shape_cast %5 : vector<1x4x256xf32> to vector<4x256xf32>
    %7 = vector.broadcast %0 : vector<4x1xf32> to vector<4x256xf32>
    %8 = arith.mulf %6, %7 : vector<4x256xf32>
    %9 = vector.broadcast %1 : vector<4x1xf32> to vector<4x256xf32>
    %10 = arith.addf %8, %9 : vector<4x256xf32>
    %cst = arith.constant 0.000000e+00 : f32
    %11 = vector.broadcast %cst : f32 to vector<4x256xf32>
    %12 = arith.maximumf %10, %11 : vector<4x256xf32>
    %cst_12 = arith.constant dense<0.000000e+00> : vector<8x256xf32>
    %13 = tpu.matmul %3, %12, %cst_12 {dimension_numbers = #tpu.dot_dimension_numbers<[1], [0], [0], [1], [0, 0, 1, 1], [], []>} : vector<8x4xf32>, vector<4x256xf32>, vector<8x256xf32> -> vector<8x256xf32>
    %14 = vector.broadcast %2 : vector<8x1xf32> to vector<8x256xf32>
    %15 = arith.addf %13, %14 : vector<8x256xf32>
    %cst_13 = arith.constant 0.000000e+00 : f32
    %16 = vector.broadcast %cst_13 : f32 to vector<8x256xf32>
    %17 = arith.maximumf %15, %16 : vector<8x256xf32>
    %cst_14 = arith.constant dense<0.000000e+00> : vector<16x256xf32>
    %18 = tpu.matmul %4, %17, %cst_14 {dimension_numbers = #tpu.dot_dimension_numbers<[1], [0], [0], [1], [0, 0, 1, 1], [], []>} : vector<16x8xf32>, vector<8x256xf32>, vector<16x256xf32> -> vector<16x256xf32>
    %c0_15 = arith.constant 0 : index
    %c0_16 = arith.constant 0 : index
    %c0_17 = arith.constant 0 : index
    %19 = vector.load %arg8[%c0_15, %c0_16, %c0_17] : memref<2x16x256xf32, #tpu.memory_space<vmem>>, vector<1x16x256xf32>
    %20 = vector.shape_cast %19 : vector<1x16x256xf32> to vector<16x256xf32>
    %21 = vector.shape_cast %18 : vector<16x256xf32> to vector<1x16x256xf32>
    tpu.vector_store %arg8[%c0_15, %c0_16, %c0_17], %21 {strides = array<i32>} : memref<2x16x256xf32, #tpu.memory_space<vmem>>, vector<1x16x256xf32>,
    %c1 = arith.constant 1 : index
    %c0_18 = arith.constant 0 : index
    %c0_19 = arith.constant 0 : index
    %22 = vector.load %arg2[%c1, %c0_18, %c0_19] : memref<2x4x256xf32, #tpu.memory_space<vmem>>, vector<1x4x256xf32>
    %23 = vector.shape_cast %22 : vector<1x4x256xf32> to vector<4x256xf32>
    %24 = vector.broadcast %0 : vector<4x1xf32> to vector<4x256xf32>
    %25 = arith.mulf %23, %24 : vector<4x256xf32>
    %26 = vector.broadcast %1 : vector<4x1xf32> to vector<4x256xf32>
    %27 = arith.addf %25, %26 : vector<4x256xf32>
    %cst_20 = arith.constant 0.000000e+00 : f32
    %28 = vector.broadcast %cst_20 : f32 to vector<4x256xf32>
    %29 = arith.maximumf %27, %28 : vector<4x256xf32>
    %cst_21 = arith.constant dense<0.000000e+00> : vector<8x256xf32>
    %30 = tpu.matmul %3, %29, %cst_21 {dimension_numbers = #tpu.dot_dimension_numbers<[1], [0], [0], [1], [0, 0, 1, 1], [], []>} : vector<8x4xf32>, vector<4x256xf32>, vector<8x256xf32> -> vector<8x256xf32>
    %31 = vector.broadcast %2 : vector<8x1xf32> to vector<8x256xf32>
    %32 = arith.addf %30, %31 : vector<8x256xf32>
    %cst_22 = arith.constant 0.000000e+00 : f32
    %33 = vector.broadcast %cst_22 : f32 to vector<8x256xf32>
    %34 = arith.maximumf %32, %33 : vector<8x256xf32>
    %cst_23 = arith.constant dense<0.000000e+00> : vector<16x256xf32>
    %35 = tpu.matmul %4, %34, %cst_23 {dimension_numbers = #tpu.dot_dimension_numbers<[1], [0], [0], [1], [0, 0, 1, 1], [], []>} : vector<16x8xf32>, vector<8x256xf32>, vector<16x256xf32> -> vector<16x256xf32>
    %c1_24 = arith.constant 1 : index
    %c0_25 = arith.constant 0 : index
    %c0_26 = arith.constant 0 : index
    %36 = vector.load %arg8[%c1_24, %c0_25, %c0_26] : memref<2x16x256xf32, #tpu.memory_space<vmem>>, vector<1x16x256xf32>
    %37 = vector.shape_cast %36 : vector<1x16x256xf32> to vector<16x256xf32>
    %38 = vector.shape_cast %35 : vector<16x256xf32> to vector<1x16x256xf32>
    tpu.vector_store %arg8[%c1_24, %c0_25, %c0_26], %38 {strides = array<i32>} : memref<2x16x256xf32, #tpu.memory_space<vmem>>, vector<1x16x256xf32>,
    return
  }
  func.func @transform_0(%arg0: i32, %arg1: i32) -> (i32, i32, i32) {
    %c0_i32 = arith.constant 0 : i32
    %c0_i32_0 = arith.constant 0 : i32
    return %arg0, %c0_i32, %arg1 : i32, i32, i32
  }
  func.func @transform_1(%arg0: i32, %arg1: i32) -> (i32, i32) {
    %c0_i32 = arith.constant 0 : i32
    %c0_i32_0 = arith.constant 0 : i32
    %c0_i32_1 = arith.constant 0 : i32
    return %c0_i32, %c0_i32_0 : i32, i32
  }
  func.func @transform_2(%arg0: i32, %arg1: i32) -> (i32, i32) {
    %c0_i32 = arith.constant 0 : i32
    %c0_i32_0 = arith.constant 0 : i32
    %c0_i32_1 = arith.constant 0 : i32
    return %c0_i32, %c0_i32_0 : i32, i32
  }
  func.func @transform_3(%arg0: i32, %arg1: i32) -> (i32, i32) {
    %c0_i32 = arith.constant 0 : i32
    %c0_i32_0 = arith.constant 0 : i32
    %c0_i32_1 = arith.constant 0 : i32
    return %c0_i32, %c0_i32_0 : i32, i32
  }
  func.func @transform_4(%arg0: i32, %arg1: i32) -> (i32, i32) {
    %c0_i32 = arith.constant 0 : i32
    %c0_i32_0 = arith.constant 0 : i32
    %c0_i32_1 = arith.constant 0 : i32
    return %c0_i32, %c0_i32_0 : i32, i32
  }
  func.func @transform_5(%arg0: i32, %arg1: i32) -> (i32, i32) {
    %c0_i32 = arith.constant 0 : i32
    %c0_i32_0 = arith.constant 0 : i32
    %c0_i32_1 = arith.constant 0 : i32
    return %c0_i32, %c0_i32_0 : i32, i32
  }
  func.func @transform_6(%arg0: i32, %arg1: i32) -> (i32, i32, i32) {
    %c0_i32 = arith.constant 0 : i32
    %c0_i32_0 = arith.constant 0 : i32
    return %arg0, %c0_i32, %arg1 : i32, i32, i32
  }
}

</mosaic_0001>

<bundles_post_ra>
// kernel: tpu_custom_call.1
= control target key start
LH: loop header
LB: loop body
LE: loop exit
PB: predicated region body
PF: predicated region fallthrough
CT: control target
= control target key end

     0   :  { %v343_v1 = vmov 0   ;;  %s418_s0 = inlined_call_operand.vmem [shape: f32[2,4,256], index: 0, kind: input, shape index: {}]   ;;  %s419_s1 = inlined_call_operand.vmem [shape: f32[4,1], index: 1, kind: input, shape index: {}]   ;;  %s420_s2 = inlined_call_operand.vmem [shape: f32[4,1], index: 2, kind: input, shape index: {}]   ;;  %s421_s3 = inlined_call_operand.vmem [shape: f32[8,4], index: 3, kind: input, shape index: {}]   ;;  %s422_s4 = inlined_call_operand.vmem [shape: f32[8,1], index: 4, kind: input, shape index: {}]   ;;  %s423_s5 = inlined_call_operand.vmem [shape: f32[16,8], index: 5, kind: input, shape index: {}]   ;;  %s424_s6 = inlined_call_operand.hbm [shape: f32[2,16,256], index: 6, kind: output, shape index: {}]  }
   0x1   :  { %v24_v0 = vld [vmem:[%s419_s1] sm:$0xf]  ;;  %315 = vset.pattern.permute.xlu0 %v343_v1  ;;  %316 = vset.pattern.permute.xlu1 %v343_v1 }
   0x2   :  { %11 = vsyncpa [#allocation3], 0  ;;  %33 = vperm.xlu0 %315, %v24_v0   ;;  %v25_v2 = vld [vmem:[%s420_s2] sm:$0xf]  ;;  %v344_v3 = vmov 839922192  }
   0x3   :  { %v36_v4 = vunpack.c.l.s4 %v344_v3  ;;  %v26_v6 = vld [vmem:[%s422_s4] sm:$0xff]  ;;  %v301_v14 = vld [vmem:[%s418_s0 + $0x8] sm:$0xff]  ;;  %vm65_vm0 = vcmask 1043456   ;;  %vm61_vm1 = vcmask 31744   ;;  %vm112_vm2 = vcmask 64512   ;;  %s345_s8 = smov [#allocation2]  }
   0x4   :  { %54 = vperm.xlu1 %316, %v26_v6   ;;  %v30_v9 = vld [vmem:[%s418_s0] sm:$0xff]  ;;  %v29_v38 = vld [vmem:[%s423_s5 + $0x8] sm:$0xff]  ;;  %s281_s11 = sshll.u32 %s424_s6, 4  ;;  %s346_s12 = smov 256   ;;  %s282_s11 = int_to_ptr.hbm [resolvable:$true] %s281_s11 }
   0x5   :  { %v37_v7 = vunpack.c.0.s8 %v36_v4  ;;  %v27_v19 = vld [vmem:[%s421_s3] sm:$0xff]  ;;  %s347_s13 = smov 16  }
   0x6   :  { %v28_v35 = vld [vmem:[%s423_s5] sm:$0xff]  ;;  %s279_s5 = sshll.u32 %s345_s8, 4  ;;  %s280_s5 = int_to_ptr.vmem [resolvable:$true] %s279_s5 }
   0xa   :  { %43 = vperm.xlu0 %315, %v25_v2  }
  0x74   :  { %v34_v5 = vpop.permute.xlu0 %33 }
  0x75   :  { %v38_v8 = vperm.slane %v34_v5, %v37_v7 }
  0x76   :  { %v55_v24 = vpop.permute.xlu1 %54 }
  0x77   :  { %v40_v11 = vmul.f32 %v38_v8, %v30_v9  ;;  %v171_v16 = vmul.f32 %v301_v14, %v38_v8 }
  0x7c   :  { %v44_v10 = vpop.permute.xlu0 %43 }
  0x7d   :  { %v48_v12 = vperm.slane %v44_v10, %v37_v7 }
  0x7f   :  { %v50_v13 = vadd.f32 %v48_v12, %v40_v11  ;;  %v172_v17 = vadd.f32 %v171_v16, %v48_v12 }
  0x81   :  { %v51_v15 = vmax.f32 %v50_v13, 0.0  ;;  %v173_v18 = vmax.f32 %v172_v17, 0.0 }
  0x83   :  { %58 = vst [vmem:[#allocation1] ss:$2 sm:$0xff] %v51_v15 }
  0x8a   :  { %v59_v20 = vld.sshfl [vmem:[#allocation1] sm:$0xff pattern:$0x75316420]  ;;  %v60_v21 = vld.sshfl [vmem:[#allocation1 + $0x8] sm:$0xff pattern:$0x75316420] }
  0x8b   :  { %293 = vmatpush.msk.msra.mxu2 %vm65_vm0, %v59_v20  ;;  %295 = vmatpush.msk.msra.mxu3 %vm65_vm0, %v60_v21  ;;  %175 = vst [vmem:[#allocation1] ss:$2 sm:$0xff] %v173_v18 }
  0x8c   :  { %294 = vmatmul.msk.f32.vlgmr.msra.gmra.mxu2 %vm61_vm1, %v27_v19  ;;  %296 = vmatmul.msk.f32.vlgmr.msra.gmra.mxu3 %vm61_vm1, %v27_v19 }
  0x92   :  { %v176_v22 = vld.sshfl [vmem:[#allocation1] sm:$0xff pattern:$0x75316420]  ;;  %v177_v23 = vld.sshfl [vmem:[#allocation1 + $0x8] sm:$0xff pattern:$0x75316420] }
  0x93   :  { %302 = vmatpush.msk.msra.mxu0 %vm65_vm0, %v176_v22  ;;  %304 = vmatpush.msk.msra.mxu1 %vm65_vm0, %v177_v23 }
  0x94   :  { %303 = vmatmul.msk.f32.vlgmr.msra.gmra.mxu0 %vm61_vm1, %v27_v19  ;;  %305 = vmatmul.msk.f32.vlgmr.msra.gmra.mxu1 %vm61_vm1, %v27_v19 }
 0x10f   :  { %v87_v25 = vpop.f32.mrf.mxu2  ;;  %v107_v26 = vpop.f32.mrf.mxu3 }
 0x110   :  { %v88_v27 = vadd.f32 %v87_v25, %v55_v24  ;;  %v108_v28 = vadd.f32 %v107_v26, %v55_v24 }
 0x111   :  { %v199_v29 = vpop.f32.mrf.mxu0  ;;  %v219_v30 = vpop.f32.mrf.mxu1 }
 0x112   :  { %v110_v31 = vmax.f32 %v88_v27, 0.0  ;;  %v111_v32 = vmax.f32 %v108_v28, 0.0  ;;  %v200_v33 = vadd.f32 %v199_v29, %v55_v24  ;;  %v220_v34 = vadd.f32 %v219_v30, %v55_v24 }
 0x114   :  { %v222_v36 = vmax.f32 %v200_v33, 0.0  ;;  %v223_v37 = vmax.f32 %v220_v34, 0.0  ;;  %134 = vmatpush.msrb.mxu2 %v110_v31  ;;  %157 = vmatpush.msrb.mxu3 %v111_v32 }
 0x115   :  { %297 = vmatmul.msk.f32.vlgmr.msrb.gmra.mxu2 %vm112_vm2, %v28_v35  ;;  %299 = vmatmul.msk.f32.vlgmr.msrb.gmra.mxu3 %vm112_vm2, %v28_v35 }
 0x116   :  { %239 = vmatpush.msrb.mxu0 %v222_v36  ;;  %262 = vmatpush.msrb.mxu1 %v223_v37 }
 0x117   :  { %306 = vmatmul.msk.f32.vlgmr.msrb.gmra.mxu0 %vm112_vm2, %v28_v35  ;;  %308 = vmatmul.msk.f32.vlgmr.msrb.gmra.mxu1 %vm112_vm2, %v28_v35 }
 0x11d   :  { %298 = vmatmul.msk.f32.gmra.mxu2 %vm112_vm2, %v29_v38  ;;  %300 = vmatmul.msk.f32.gmra.mxu3 %vm112_vm2, %v29_v38 }
 0x11f   :  { %307 = vmatmul.msk.f32.gmra.mxu0 %vm112_vm2, %v29_v38  ;;  %309 = vmatmul.msk.f32.gmra.mxu1 %vm112_vm2, %v29_v38 }
 0x194   :  { %v241_v39 = vpop.f32.mrf.mxu0  ;;  %v264_v40 = vpop.f32.mrf.mxu1 }
 0x195   :  { %271 = vst [vmem:[#allocation2 + $0x20] sm:$0xff] %v241_v39 }
 0x196   :  { %272 = vst [vmem:[#allocation2 + $0x28] sm:$0xff] %v264_v40 }
 0x198   :  { %v136_v41 = vpop.f32.mrf.mxu2  ;;  %v159_v42 = vpop.f32.mrf.mxu3 }
 0x199   :  { %165 = vst [vmem:[#allocation2] sm:$0xff] %v136_v41 }
 0x19a   :  { %166 = vst [vmem:[#allocation2 + $0x8] sm:$0xff] %v159_v42 }
 0x19c   :  { %v244_v43 = vpop.f32.mrf.mxu0  ;;  %v267_v44 = vpop.f32.mrf.mxu1 }
 0x19d   :  { %273 = vst [vmem:[#allocation2 + $0x30] sm:$0xff] %v244_v43 }
 0x19e   :  { %274 = vst [vmem:[#allocation2 + $0x38] sm:$0xff] %v267_v44 }
 0x1a0   :  { %v139_v45 = vpop.f32.mrf.mxu2  ;;  %v162_v46 = vpop.f32.mrf.mxu3 }
 0x1a1   :  { %167 = vst [vmem:[#allocation2 + $0x10] sm:$0xff] %v139_v45 }
 0x1a2   :  { %168 = vst [vmem:[#allocation2 + $0x18] sm:$0xff] %v162_v46 }
 0x1a3   :  { %287 = dma.vmem_to_hbm [thread:$0]  %s280_s5, 1024, %s282_s11, [#allocation3], %s346_s12, %s346_s12, %s347_s13  }
 0x1a4   :  { %341 = dma.done.wait [#allocation3], 1024  }
 0x1a5   :  { %342 = vsyncadd [#allocation3], 4294966272 }
 0x1a6   :  { %292 = vsyncpa [#allocation3], 1 }

</bundles_post_ra>
